<compile_context>
chip_gen: v6e
topology: v6e:2x2x1
jax: 0.10.0
libtpu: 0.0.40
codegen_flags: <defaults>
</compile_context>

<pallas_src>
import functools

import jax
import jax.numpy as jnp
from jax.experimental import pallas as pl
from jax.experimental.pallas import tpu as pltpu

# Logical (PyTorch) dims and lane-dense padded dims.
N_IN, N1, N2, N_OUT = 28 * 28, 500, 256, 10
D_IN, D1, D2, D_OUT = 896, 512, 256, 128


def mlp_kernel(x_ref, w1_ref, b1_ref, w2_ref, b2_ref, w3_ref, b3_ref, o_ref):
    # fc1 + ReLU: bf16 MXU inputs, f32 accumulation, f32 bias/activation.
    h1 = jnp.dot(x_ref[...], w1_ref[...], preferred_element_type=jnp.float32)
    h1 = jnp.maximum(h1 + b1_ref[...], 0.0).astype(jnp.bfloat16)
    # fc2 + ReLU
    h2 = jnp.dot(h1, w2_ref[...], preferred_element_type=jnp.float32)
    h2 = jnp.maximum(h2 + b2_ref[...], 0.0).astype(jnp.bfloat16)
    # fc3 (no activation); output lanes padded to 128, sliced in the wrapper.
    h3 = jnp.dot(h2, w3_ref[...], preferred_element_type=jnp.float32)
    o_ref[...] = (h3 + b3_ref[...]).astype(o_ref.dtype)


def _round_up(n, m):
    return ((n + m - 1) // m) * m


@functools.partial(jax.jit, static_argnames=("tb",))
def mlp_forward(x, params, *, tb=256):
    """x: (B, 1, 28, 28) or (B, 784). Returns (B, 10) float32."""
    w1, b1, w2, b2, w3, b3 = params
    x2d = x.reshape(-1, N_IN).astype(jnp.float32)
    B = x2d.shape[0]

    # Pad feature dims to lane-dense sizes; cast matmul operands to bf16 once.
    xP = jnp.pad(x2d, ((0, 0), (0, D_IN - N_IN)))
    w1P = jnp.pad(w1, ((0, D_IN - N_IN), (0, D1 - N1))).astype(jnp.bfloat16)
    b1P = jnp.pad(b1, ((0, 0), (0, D1 - N1)))
    w2P = jnp.pad(w2, ((0, D1 - N1), (0, 0))).astype(jnp.bfloat16)
    b2P = b2
    w3P = jnp.pad(w3, ((0, 0), (0, D_OUT - N_OUT))).astype(jnp.bfloat16)
    b3P = jnp.pad(b3, ((0, 0), (0, D_OUT - N_OUT)))

    # Batch tiling: TB kept modest (<= 256 rows -> ~0.5 MB bf16 x-tile) so the
    # resident weights (~1.2 MB bf16) + double-buffered x/out fit comfortably
    # under v5e's 16 MiB scoped-VMEM default and v7x's 64 MiB physical VMEM.
    TB = min(tb, _round_up(B, 8))
    B_pad = _round_up(B, TB)
    xP = jnp.pad(xP, ((0, B_pad - B), (0, 0))).astype(jnp.bfloat16)
    grid = (B_pad // TB,)

    def const(a):  # full-array block, fixed index -> VMEM-resident across grid
        return pl.BlockSpec(a.shape, lambda i: (0,) * a.ndim)

    flops = 2 * B_pad * (D_IN * D1 + D1 * D2 + D2 * D_OUT)
    bytes_accessed = (
        xP.size * 2
        + (w1P.size + w2P.size + w3P.size) * 2
        + (b1P.size + b2P.size + b3P.size) * 4
        + B_pad * D_OUT * 4
    )

    out = pl.pallas_call(
        mlp_kernel,
        out_shape=jax.ShapeDtypeStruct((B_pad, D_OUT), jnp.float32),
        grid=grid,
        in_specs=[
            pl.BlockSpec((TB, D_IN), lambda i: (i, 0)),  # streamed input tile
            const(w1P), const(b1P),
            const(w2P), const(b2P),
            const(w3P), const(b3P),
        ],
        out_specs=pl.BlockSpec((TB, D_OUT), lambda i: (i, 0)),
        compiler_params=pltpu.CompilerParams(
            dimension_semantics=("parallel",)),
        cost_estimate=pl.CostEstimate(
            flops=flops, transcendentals=0, bytes_accessed=bytes_accessed),
    )(xP, w1P, b1P, w2P, b2P, w3P, b3P)

    return out[:B, :N_OUT]


def init_params(key):
    """Deterministic init mimicking nn.Linear default: U(-1/sqrt(fan_in), ...)."""
    dims = [(N_IN, N1), (N1, N2), (N2, N_OUT)]
    params = []
    for fan_in, fan_out in dims:
        kw, kb, key = jax.random.split(key, 3)
        bound = 1.0 / jnp.sqrt(jnp.float32(fan_in))
        # stored as (in, out) so the kernel computes x @ W (== PyTorch x @ W.T)
        w = jax.random.uniform(kw, (fan_in, fan_out), jnp.float32, -bound, bound)
        b = jax.random.uniform(kb, (1, fan_out), jnp.float32, -bound, bound)
        params += [w, b]
    return tuple(params)


def reference_forward(x, params):
    w1, b1, w2, b2, w3, b3 = params
    h = x.reshape(-1, N_IN).astype(jnp.float32)
    h = jnp.maximum(h @ w1 + b1, 0.0)
    h = jnp.maximum(h @ w2 + b2, 0.0)
    return h @ w3 + b3


if __name__ == "__main__":
    key = jax.random.PRNGKey(0)
    kx, kp = jax.random.split(key)
    params = init_params(kp)

    # small batch, NCHW input like MNIST
    x = jax.random.normal(kx, (2, 1, 28, 28), jnp.float32)

    out = jax.block_until_ready(mlp_forward(x, params))
    ref = reference_forward(x, params)

    assert out.shape == (2, 10), out.shape
    err = float(jnp.max(jnp.abs(out - ref)))
    # bf16 MXU inputs vs f32 reference -> loose tolerance
    assert err < 1e-1, err

    print("KERNEL_OK")
</pallas_src>

<mosaic_0001>
module attributes {stable_mosaic.version = 11 : i64} {
  func.func @mlp_kernel(%arg0: i32, %arg1: memref<8x896xbf16, #tpu.memory_space<vmem>>, %arg2: memref<896x512xbf16, #tpu.memory_space<vmem>>, %arg3: memref<1x512xf32, #tpu.memory_space<vmem>>, %arg4: memref<512x256xbf16, #tpu.memory_space<vmem>>, %arg5: memref<1x256xf32, #tpu.memory_space<vmem>>, %arg6: memref<256x128xbf16, #tpu.memory_space<vmem>>, %arg7: memref<1x128xf32, #tpu.memory_space<vmem>>, %arg8: memref<8x128xf32, #tpu.memory_space<vmem>>) attributes {dimension_semantics = [#tpu.dimension_semantics<parallel>], iteration_bounds = array<i64: 1>, scalar_prefetch = 0 : i64, scratch_operands = 0 : i64, tpu.core_type = #tpu.core_type<tc>, window_params = [{transform_indices = @transform_0, window_bounds = array<i64: 8, 896>}, {pipeline_mode = #tpu.pipeline_mode<synchronous>, transform_indices = @transform_1, window_bounds = array<i64: 896, 512>}, {pipeline_mode = #tpu.pipeline_mode<synchronous>, transform_indices = @transform_2, window_bounds = array<i64: 1, 512>}, {pipeline_mode = #tpu.pipeline_mode<synchronous>, transform_indices = @transform_3, window_bounds = array<i64: 512, 256>}, {pipeline_mode = #tpu.pipeline_mode<synchronous>, transform_indices = @transform_4, window_bounds = array<i64: 1, 256>}, {pipeline_mode = #tpu.pipeline_mode<synchronous>, transform_indices = @transform_5, window_bounds = array<i64: 256, 128>}, {pipeline_mode = #tpu.pipeline_mode<synchronous>, transform_indices = @transform_6, window_bounds = array<i64: 1, 128>}, {transform_indices = @transform_7, window_bounds = array<i64: 8, 128>}]} {
    %c0 = arith.constant 0 : index
    %c0_0 = arith.constant 0 : index
    %0 = vector.load %arg1[%c0, %c0_0] : memref<8x896xbf16, #tpu.memory_space<vmem>>, vector<8x896xbf16>
    %c0_1 = arith.constant 0 : index
    %c0_2 = arith.constant 0 : index
    %1 = vector.load %arg2[%c0_1, %c0_2] : memref<896x512xbf16, #tpu.memory_space<vmem>>, vector<896x512xbf16>
    %cst = arith.constant dense<0.000000e+00> : vector<8x512xf32>
    %2 = tpu.matmul %0, %1, %cst {dimension_numbers = #tpu.dot_dimension_numbers<[1], [0], [0], [1], [0, 0, 1, 1], [], []>} : vector<8x896xbf16>, vector<896x512xbf16>, vector<8x512xf32> -> vector<8x512xf32>
    %c0_3 = arith.constant 0 : index
    %c0_4 = arith.constant 0 : index
    %3 = vector.load %arg3[%c0_3, %c0_4] : memref<1x512xf32, #tpu.memory_space<vmem>>, vector<1x512xf32>
    %4 = vector.broadcast %3 : vector<1x512xf32> to vector<8x512xf32>
    %5 = arith.addf %2, %4 : vector<8x512xf32>
    %cst_5 = arith.constant 0.000000e+00 : f32
    %6 = vector.broadcast %cst_5 : f32 to vector<8x512xf32>
    %7 = arith.maximumf %5, %6 : vector<8x512xf32>
    %8 = arith.truncf %7 : vector<8x512xf32> to vector<8x512xbf16>
    %c0_6 = arith.constant 0 : index
    %c0_7 = arith.constant 0 : index
    %9 = vector.load %arg4[%c0_6, %c0_7] : memref<512x256xbf16, #tpu.memory_space<vmem>>, vector<512x256xbf16>
    %cst_8 = arith.constant dense<0.000000e+00> : vector<8x256xf32>
    %10 = tpu.matmul %8, %9, %cst_8 {dimension_numbers = #tpu.dot_dimension_numbers<[1], [0], [0], [1], [0, 0, 1, 1], [], []>} : vector<8x512xbf16>, vector<512x256xbf16>, vector<8x256xf32> -> vector<8x256xf32>
    %c0_9 = arith.constant 0 : index
    %c0_10 = arith.constant 0 : index
    %11 = vector.load %arg5[%c0_9, %c0_10] : memref<1x256xf32, #tpu.memory_space<vmem>>, vector<1x256xf32>
    %12 = vector.broadcast %11 : vector<1x256xf32> to vector<8x256xf32>
    %13 = arith.addf %10, %12 : vector<8x256xf32>
    %cst_11 = arith.constant 0.000000e+00 : f32
    %14 = vector.broadcast %cst_11 : f32 to vector<8x256xf32>
    %15 = arith.maximumf %13, %14 : vector<8x256xf32>
    %16 = arith.truncf %15 : vector<8x256xf32> to vector<8x256xbf16>
    %c0_12 = arith.constant 0 : index
    %c0_13 = arith.constant 0 : index
    %17 = vector.load %arg6[%c0_12, %c0_13] : memref<256x128xbf16, #tpu.memory_space<vmem>>, vector<256x128xbf16>
    %cst_14 = arith.constant dense<0.000000e+00> : vector<8x128xf32>
    %18 = tpu.matmul %16, %17, %cst_14 {dimension_numbers = #tpu.dot_dimension_numbers<[1], [0], [0], [1], [0, 0, 1, 1], [], []>} : vector<8x256xbf16>, vector<256x128xbf16>, vector<8x128xf32> -> vector<8x128xf32>
    %c0_15 = arith.constant 0 : index
    %c0_16 = arith.constant 0 : index
    %19 = vector.load %arg7[%c0_15, %c0_16] : memref<1x128xf32, #tpu.memory_space<vmem>>, vector<1x128xf32>
    %20 = vector.broadcast %19 : vector<1x128xf32> to vector<8x128xf32>
    %21 = arith.addf %18, %20 : vector<8x128xf32>
    %c0_17 = arith.constant 0 : index
    %c0_18 = arith.constant 0 : index
    %22 = vector.load %arg8[%c0_17, %c0_18] : memref<8x128xf32, #tpu.memory_space<vmem>>, vector<8x128xf32>
    tpu.vector_store %arg8[%c0_17, %c0_18], %21 {strides = array<i32>} : memref<8x128xf32, #tpu.memory_space<vmem>>, vector<8x128xf32>,
    return
  }
  func.func @transform_0(%arg0: i32) -> (i32, i32) {
    %c0_i32 = arith.constant 0 : i32
    %c0_i32_0 = arith.constant 0 : i32
    return %arg0, %c0_i32 : i32, i32
  }
  func.func @transform_1(%arg0: i32) -> (i32, i32) {
    %c0_i32 = arith.constant 0 : i32
    %c0_i32_0 = arith.constant 0 : i32
    %c0_i32_1 = arith.constant 0 : i32
    return %c0_i32, %c0_i32_0 : i32, i32
  }
  func.func @transform_2(%arg0: i32) -> (i32, i32) {
    %c0_i32 = arith.constant 0 : i32
    %c0_i32_0 = arith.constant 0 : i32
    %c0_i32_1 = arith.constant 0 : i32
    return %c0_i32, %c0_i32_0 : i32, i32
  }
  func.func @transform_3(%arg0: i32) -> (i32, i32) {
    %c0_i32 = arith.constant 0 : i32
    %c0_i32_0 = arith.constant 0 : i32
    %c0_i32_1 = arith.constant 0 : i32
    return %c0_i32, %c0_i32_0 : i32, i32
  }
  func.func @transform_4(%arg0: i32) -> (i32, i32) {
    %c0_i32 = arith.constant 0 : i32
    %c0_i32_0 = arith.constant 0 : i32
    %c0_i32_1 = arith.constant 0 : i32
    return %c0_i32, %c0_i32_0 : i32, i32
  }
  func.func @transform_5(%arg0: i32) -> (i32, i32) {
    %c0_i32 = arith.constant 0 : i32
    %c0_i32_0 = arith.constant 0 : i32
    %c0_i32_1 = arith.constant 0 : i32
    return %c0_i32, %c0_i32_0 : i32, i32
  }
  func.func @transform_6(%arg0: i32) -> (i32, i32) {
    %c0_i32 = arith.constant 0 : i32
    %c0_i32_0 = arith.constant 0 : i32
    %c0_i32_1 = arith.constant 0 : i32
    return %c0_i32, %c0_i32_0 : i32, i32
  }
  func.func @transform_7(%arg0: i32) -> (i32, i32) {
    %c0_i32 = arith.constant 0 : i32
    %c0_i32_0 = arith.constant 0 : i32
    return %arg0, %c0_i32 : i32, i32
  }
}

</mosaic_0001>

<bundles_post_ra>
// kernel: mlp_forward.1
= control target key start
LH: loop header
LB: loop body
LE: loop exit
PB: predicated region body
PF: predicated region fallthrough
CT: control target
= control target key end

     0   :  { %s4249_s1 = inlined_call_operand.vmem [shape: bf16[896,512], index: 1, kind: input, shape index: {}]   ;;  %s4250_s0 = inlined_call_operand.vmem [shape: bf16[8,896], index: 0, kind: input, shape index: {}]   ;;  %s4251_s3 = inlined_call_operand.vmem [shape: bf16[512,256], index: 3, kind: input, shape index: {}]   ;;  %s4252_s2 = inlined_call_operand.vmem [shape: f32[1,512], index: 2, kind: input, shape index: {}]   ;;  %s4253_s5 = inlined_call_operand.vmem [shape: bf16[256,128], index: 5, kind: input, shape index: {}]   ;;  %s4254_s4 = inlined_call_operand.vmem [shape: f32[1,256], index: 4, kind: input, shape index: {}]   ;;  %s4255_s6 = inlined_call_operand.vmem [shape: f32[1,128], index: 6, kind: input, shape index: {}]   ;;  %s4256_s7 = inlined_call_operand.vmem [shape: f32[8,128], index: 7, kind: output, shape index: {}]  }
   0x1   :  { %v2755_v0 = vld [vmem:[%s4249_s1 + $0xe4] ss:$16 sps:$4 sm:$0xff]   ;;  %v2759_v2 = vld [vmem:[%s4249_s1 + $0xe0] ss:$16 sps:$4 sm:$0xff]   ;;  %v28_v48 = vld [vmem:[%s4250_s0 + $0x8] sm:$0xff] }
   0x2   :  { %v2757_v1 = vld [vmem:[%s4249_s1 + $0x2e4] ss:$16 sps:$4 sm:$0xff]   ;;  %1422 = vmatprep.subr.bf16.mxu0 %v2755_v0  ;;  %v2760_v3 = vld [vmem:[%s4249_s1 + $0x2e0] ss:$16 sps:$4 sm:$0xff]   ;;  %v3403_v51 = vcombine.high %v28_v48, %v28_v48 }
   0x3   :  { %1463 = vmatprep.subr.bf16.mxu1 %v2757_v1  ;;  %v2761_v4 = vld [vmem:[%s4249_s1 + $0xc4] ss:$16 sps:$4 sm:$0xff]   ;;  %1423 = vmatpush1.bf16.msra.mxu0 %v2759_v2  ;;  %v2765_v6 = vld [vmem:[%s4249_s1 + $0xc0] ss:$16 sps:$4 sm:$0xff]  }
   0x4   :  { %1464 = vmatpush1.bf16.msra.mxu1 %v2760_v3  ;;  %v2763_v5 = vld [vmem:[%s4249_s1 + $0x2c4] ss:$16 sps:$4 sm:$0xff]   ;;  %1424 = vmatprep.subr.bf16.mxu0 %v2761_v4  ;;  %v2766_v7 = vld [vmem:[%s4249_s1 + $0x2c0] ss:$16 sps:$4 sm:$0xff]  }
   0x5   :  { %1465 = vmatprep.subr.bf16.mxu1 %v2763_v5  ;;  %v2767_v8 = vld [vmem:[%s4249_s1 + $0xa4] ss:$16 sps:$4 sm:$0xff]   ;;  %v2771_v10 = vld [vmem:[%s4249_s1 + $0xa0] ss:$16 sps:$4 sm:$0xff]   ;;  %1495 = vmatprep.mubr.bf16.mxu1 %v3403_v51 }
   0x6   :  { %v2769_v9 = vld [vmem:[%s4249_s1 + $0x2a4] ss:$16 sps:$4 sm:$0xff]   ;;  %v2772_v11 = vld [vmem:[%s4249_s1 + $0x2a0] ss:$16 sps:$4 sm:$0xff]  }
   0x7   :  { %1425 = vmatpush1.bf16.msra.mxu0 %v2765_v6  ;;  %v2773_v12 = vld [vmem:[%s4249_s1 + $0x84] ss:$16 sps:$4 sm:$0xff]   ;;  %v2777_v14 = vld [vmem:[%s4249_s1 + $0x80] ss:$16 sps:$4 sm:$0xff]  }
   0x8   :  { %1466 = vmatpush1.bf16.msra.mxu1 %v2766_v7  ;;  %1426 = vmatprep.subr.bf16.mxu0 %v2767_v8  ;;  %v2775_v13 = vld [vmem:[%s4249_s1 + $0x284] ss:$16 sps:$4 sm:$0xff]   ;;  %v2778_v15 = vld [vmem:[%s4249_s1 + $0x280] ss:$16 sps:$4 sm:$0xff]   ;;  %v3463_v7 = vcombine.low %v28_v48, %v28_v48  ;;  %v2915_v48 = vld [vmem:[%s4249_s1 + $0xcc] ss:$16 sps:$4 sm:$0xff]  }
   0x9   :  { %1467 = vmatprep.subr.bf16.mxu1 %v2769_v9  ;;  %v2779_v16 = vld [vmem:[%s4249_s1 + $0x64] ss:$16 sps:$4 sm:$0xff]   ;;  %v2783_v18 = vld [vmem:[%s4249_s1 + $0x60] ss:$16 sps:$4 sm:$0xff]  }
   0xa   :  { %v2781_v17 = vld [vmem:[%s4249_s1 + $0x264] ss:$16 sps:$4 sm:$0xff]   ;;  %v2784_v19 = vld [vmem:[%s4249_s1 + $0x260] ss:$16 sps:$4 sm:$0xff]  }
   0xb   :  { %1427 = vmatpush1.bf16.msra.mxu0 %v2771_v10  ;;  %v2785_v20 = vld [vmem:[%s4249_s1 + $0x44] ss:$16 sps:$4 sm:$0xff]   ;;  %v2789_v22 = vld [vmem:[%s4249_s1 + $0x40] ss:$16 sps:$4 sm:$0xff]  }
   0xc   :  { %1468 = vmatpush1.bf16.msra.mxu1 %v2772_v11  ;;  %1428 = vmatprep.subr.bf16.mxu0 %v2773_v12  ;;  %v2787_v21 = vld [vmem:[%s4249_s1 + $0x244] ss:$16 sps:$4 sm:$0xff]   ;;  %v2790_v23 = vld [vmem:[%s4249_s1 + $0x240] ss:$16 sps:$4 sm:$0xff]  }
   0xd   :  { %1469 = vmatprep.subr.bf16.mxu1 %v2775_v13  ;;  %v2791_v24 = vld [vmem:[%s4249_s1 + $0x24] ss:$16 sps:$4 sm:$0xff]   ;;  %v2795_v26 = vld [vmem:[%s4249_s1 + $0x20] ss:$16 sps:$4 sm:$0xff]  }
   0xe   :  { %v2793_v25 = vld [vmem:[%s4249_s1 + $0x224] ss:$16 sps:$4 sm:$0xff]   ;;  %v2796_v27 = vld [vmem:[%s4249_s1 + $0x220] ss:$16 sps:$4 sm:$0xff]  }
   0xf   :  { %1429 = vmatpush1.bf16.msra.mxu0 %v2777_v14  ;;  %v2797_v28 = vld [vmem:[%s4249_s1 + $0x4] ss:$16 sps:$4 sm:$0xff]   ;;  %v2801_v30 = vld [vmem:[%s4249_s1] ss:$16 sps:$4 sm:$0xff]  }
  0x10   :  { %1470 = vmatpush1.bf16.msra.mxu1 %v2778_v15  ;;  %1430 = vmatprep.subr.bf16.mxu0 %v2779_v16  ;;  %v2799_v29 = vld [vmem:[%s4249_s1 + $0x204] ss:$16 sps:$4 sm:$0xff]   ;;  %v2802_v31 = vld [vmem:[%s4249_s1 + $0x200] ss:$16 sps:$4 sm:$0xff]   ;;  %v3210_v16 = vmov 0  }
  0x11   :  { %1471 = vmatprep.subr.bf16.mxu1 %v2781_v17  ;;  %v2803_v32 = vld [vmem:[%s4249_s1 + $0x1e4] ss:$16 sps:$4 sm:$0xff]   ;;  %v2807_v34 = vld [vmem:[%s4249_s1 + $0x1e0] ss:$16 sps:$4 sm:$0xff]  }
  0x12   :  { %v2805_v33 = vld [vmem:[%s4249_s1 + $0x3e4] ss:$16 sps:$4 sm:$0xff]   ;;  %v2808_v35 = vld [vmem:[%s4249_s1 + $0x3e0] ss:$16 sps:$4 sm:$0xff]  }
  0x13   :  { %1431 = vmatpush1.bf16.msra.mxu0 %v2783_v18  ;;  %v2809_v36 = vld [vmem:[%s4249_s1 + $0x1c4] ss:$16 sps:$4 sm:$0xff]   ;;  %v2813_v38 = vld [vmem:[%s4249_s1 + $0x1c0] ss:$16 sps:$4 sm:$0xff]  }
  0x14   :  { %1472 = vmatpush1.bf16.msra.mxu1 %v2784_v19  ;;  %1432 = vmatprep.subr.bf16.mxu0 %v2785_v20  ;;  %v2811_v37 = vld [vmem:[%s4249_s1 + $0x3c4] ss:$16 sps:$4 sm:$0xff]   ;;  %v2814_v39 = vld [vmem:[%s4249_s1 + $0x3c0] ss:$16 sps:$4 sm:$0xff]  }
  0x15   :  { %1473 = vmatprep.subr.bf16.mxu1 %v2787_v21  ;;  %v2815_v40 = vld [vmem:[%s4249_s1 + $0x1a4] ss:$16 sps:$4 sm:$0xff]   ;;  %v2819_v42 = vld [vmem:[%s4249_s1 + $0x1a0] ss:$16 sps:$4 sm:$0xff]  }
  0x16   :  { %v2817_v41 = vld [vmem:[%s4249_s1 + $0x3a4] ss:$16 sps:$4 sm:$0xff]   ;;  %v2820_v43 = vld [vmem:[%s4249_s1 + $0x3a0] ss:$16 sps:$4 sm:$0xff]  }
  0x17   :  { %1433 = vmatpush1.bf16.msra.mxu0 %v2789_v22  ;;  %v2821_v44 = vld [vmem:[%s4249_s1 + $0x184] ss:$16 sps:$4 sm:$0xff]   ;;  %v2825_v49 = vld [vmem:[%s4249_s1 + $0x180] ss:$16 sps:$4 sm:$0xff]  }
  0x18   :  { %1474 = vmatpush1.bf16.msra.mxu1 %v2790_v23  ;;  %1434 = vmatprep.subr.bf16.mxu0 %v2791_v24  ;;  %v2823_v45 = vld [vmem:[%s4249_s1 + $0x384] ss:$16 sps:$4 sm:$0xff]   ;;  %v2826_v50 = vld [vmem:[%s4249_s1 + $0x380] ss:$16 sps:$4 sm:$0xff]  }
  0x19   :  { %1475 = vmatprep.subr.bf16.mxu1 %v2793_v25  ;;  %v27_v46 = vld [vmem:[%s4250_s0] sm:$0xff] }
  0x1a   :  { %v3392_v47 = vcombine.high %v27_v46, %v27_v46  ;;  %v2827_v52 = vld [vmem:[%s4249_s1 + $0x164] ss:$16 sps:$4 sm:$0xff]   ;;  %v2831_v54 = vld [vmem:[%s4249_s1 + $0x160] ss:$16 sps:$4 sm:$0xff]   ;;  %v3461_v6 = vcombine.low %v27_v46, %v27_v46 }
  0x1b   :  { %1435 = vmatpush1.bf16.msra.mxu0 %v2795_v26  ;;  %v2829_v53 = vld [vmem:[%s4249_s1 + $0x364] ss:$16 sps:$4 sm:$0xff]   ;;  %v2832_v55 = vld [vmem:[%s4249_s1 + $0x360] ss:$16 sps:$4 sm:$0xff]  }
  0x1c   :  { %1476 = vmatpush1.bf16.msra.mxu1 %v2796_v27  ;;  %1436 = vmatprep.subr.bf16.mxu0 %v2797_v28  ;;  %v2833_v56 = vld [vmem:[%s4249_s1 + $0x144] ss:$16 sps:$4 sm:$0xff]   ;;  %v2837_v58 = vld [vmem:[%s4249_s1 + $0x140] ss:$16 sps:$4 sm:$0xff]  }
  0x1d   :  { %1477 = vmatprep.subr.bf16.mxu1 %v2799_v29  ;;  %1454 = vmatprep.mubr.bf16.mxu0 %v3392_v47  ;;  %v2835_v57 = vld [vmem:[%s4249_s1 + $0x344] ss:$16 sps:$4 sm:$0xff]   ;;  %v2838_v59 = vld [vmem:[%s4249_s1 + $0x340] ss:$16 sps:$4 sm:$0xff]  }
  0x1e   :  { %v2839_v60 = vld [vmem:[%s4249_s1 + $0x124] ss:$16 sps:$4 sm:$0xff]   ;;  %v2843_v62 = vld [vmem:[%s4249_s1 + $0x120] ss:$16 sps:$4 sm:$0xff]  }
  0x1f   :  { %1437 = vmatpush1.bf16.msra.mxu0 %v2801_v30  ;;  %v2841_v61 = vld [vmem:[%s4249_s1 + $0x324] ss:$16 sps:$4 sm:$0xff]   ;;  %v2844_v63 = vld [vmem:[%s4249_s1 + $0x320] ss:$16 sps:$4 sm:$0xff]  }
  0x20   :  { %1478 = vmatpush1.bf16.msra.mxu1 %v2802_v31  ;;  %1438 = vmatprep.subr.bf16.mxu0 %v2803_v32  ;;  %v2845_v0 = vld [vmem:[%s4249_s1 + $0x104] ss:$16 sps:$4 sm:$0xff]   ;;  %v2849_v2 = vld [vmem:[%s4249_s1 + $0x100] ss:$16 sps:$4 sm:$0xff]  }
  0x21   :  { %1479 = vmatprep.subr.bf16.mxu1 %v2805_v33  ;;  %v2847_v1 = vld [vmem:[%s4249_s1 + $0x304] ss:$16 sps:$4 sm:$0xff]   ;;  %v2850_v3 = vld [vmem:[%s4249_s1 + $0x300] ss:$16 sps:$4 sm:$0xff]  }
  0x22   :  { %v2857_v4 = vld [vmem:[%s4249_s1 + $0x4e4] ss:$16 sps:$4 sm:$0xff]   ;;  %v2855_v8 = vld [vmem:[%s4249_s1 + $0x4e0] ss:$16 sps:$4 sm:$0xff]  }
  0x23   :  { %1439 = vmatpush2.bf16.msra.mxu0 %v2807_v34  ;;  %v2860_v5 = vld [vmem:[%s4249_s1 + $0x6e4] ss:$16 sps:$4 sm:$0xff]   ;;  %v2858_v9 = vld [vmem:[%s4249_s1 + $0x6e0] ss:$16 sps:$4 sm:$0xff]  }
  0x24   :  { %1480 = vmatpush2.bf16.msra.mxu1 %v2808_v35  ;;  %1440 = vmatprep.subr.bf16.mxu0 %v2809_v36  ;;  %v2863_v10 = vld [vmem:[%s4249_s1 + $0x4c4] ss:$16 sps:$4 sm:$0xff]   ;;  %v2861_v12 = vld [vmem:[%s4249_s1 + $0x4c0] ss:$16 sps:$4 sm:$0xff]  }
  0x25   :  { %1481 = vmatprep.subr.bf16.mxu1 %v2811_v37  ;;  %v2866_v11 = vld [vmem:[%s4249_s1 + $0x6c4] ss:$16 sps:$4 sm:$0xff]   ;;  %v2864_v13 = vld [vmem:[%s4249_s1 + $0x6c0] ss:$16 sps:$4 sm:$0xff]  }
  0x26   :  { %v2869_v14 = vld [vmem:[%s4249_s1 + $0x4a4] ss:$16 sps:$4 sm:$0xff]   ;;  %v2867_v17 = vld [vmem:[%s4249_s1 + $0x4a0] ss:$16 sps:$4 sm:$0xff]  }
  0x27   :  { %1441 = vmatpush2.bf16.msra.mxu0 %v2813_v38  ;;  %v2872_v15 = vld [vmem:[%s4249_s1 + $0x6a4] ss:$16 sps:$4 sm:$0xff]   ;;  %v2870_v18 = vld [vmem:[%s4249_s1 + $0x6a0] ss:$16 sps:$4 sm:$0xff]  }
  0x28   :  { %1482 = vmatpush2.bf16.msra.mxu1 %v2814_v39  ;;  %1442 = vmatprep.subr.bf16.mxu0 %v2815_v40  ;;  %v2875_v19 = vld [vmem:[%s4249_s1 + $0x484] ss:$16 sps:$4 sm:$0xff]   ;;  %v2873_v21 = vld [vmem:[%s4249_s1 + $0x480] ss:$16 sps:$4 sm:$0xff]  }
  0x29   :  { %1483 = vmatprep.subr.bf16.mxu1 %v2817_v41  ;;  %v2878_v20 = vld [vmem:[%s4249_s1 + $0x684] ss:$16 sps:$4 sm:$0xff]   ;;  %v2876_v22 = vld [vmem:[%s4249_s1 + $0x680] ss:$16 sps:$4 sm:$0xff]  }
  0x2a   :  { %v2881_v23 = vld [vmem:[%s4249_s1 + $0x464] ss:$16 sps:$4 sm:$0xff]   ;;  %v2879_v25 = vld [vmem:[%s4249_s1 + $0x460] ss:$16 sps:$4 sm:$0xff]  }
  0x2b   :  { %1443 = vmatpush2.bf16.msra.mxu0 %v2819_v42  ;;  %v2884_v24 = vld [vmem:[%s4249_s1 + $0x664] ss:$16 sps:$4 sm:$0xff]   ;;  %v2882_v26 = vld [vmem:[%s4249_s1 + $0x660] ss:$16 sps:$4 sm:$0xff]   ;;  %v2909_v42 = vld [vmem:[%s4249_s1 + $0xec] ss:$16 sps:$4 sm:$0xff]  }
  0x2c   :  { %1484 = vmatpush2.bf16.msra.mxu1 %v2820_v43  ;;  %1444 = vmatprep.subr.bf16.mxu0 %v2821_v44  ;;  %v2887_v27 = vld [vmem:[%s4249_s1 + $0x444] ss:$16 sps:$4 sm:$0xff]   ;;  %v2885_v29 = vld [vmem:[%s4249_s1 + $0x440] ss:$16 sps:$4 sm:$0xff]   ;;  %v3580_v44 = vld [vmem:[%s4250_s0 + $0x18] ss:$0 sps:$4 sm:$0xff]  }
  0x2d   :  { %1485 = vmatprep.subr.bf16.mxu1 %v2823_v45  ;;  %v2890_v28 = vld [vmem:[%s4249_s1 + $0x644] ss:$16 sps:$4 sm:$0xff]   ;;  %v2888_v30 = vld [vmem:[%s4249_s1 + $0x640] ss:$16 sps:$4 sm:$0xff]   ;;  %v2907_v45 = vld [vmem:[%s4249_s1 + $0xe8] ss:$16 sps:$4 sm:$0xff]  }
  0x2e   :  { %v2893_v31 = vld [vmem:[%s4249_s1 + $0x424] ss:$16 sps:$4 sm:$0xff]   ;;  %v2891_v34 = vld [vmem:[%s4249_s1 + $0x420] ss:$16 sps:$4 sm:$0xff]  }
  0x2f   :  { %1445 = vmatpush2.bf16.msra.mxu0 %v2825_v49  ;;  %v2896_v32 = vld [vmem:[%s4249_s1 + $0x624] ss:$16 sps:$4 sm:$0xff]   ;;  %v2894_v36 = vld [vmem:[%s4249_s1 + $0x620] ss:$16 sps:$4 sm:$0xff]  }
  0x30   :  { %1486 = vmatpush2.bf16.msra.mxu1 %v2826_v50  ;;  %1446 = vmatprep.subr.bf16.mxu0 %v2827_v52  ;;  %v3543_v33 = vld [vmem:[%s4250_s0 + $0x10] sm:$0xff]  ;;  %v2913_v50 = vld [vmem:[%s4249_s1 + $0xc8] ss:$16 sps:$4 sm:$0xff]  }
  0x31   :  { %1487 = vmatprep.subr.bf16.mxu1 %v2829_v53  ;;  %v3550_v35 = vcombine.high %v3543_v33, %v3543_v33  ;;  %v2899_v37 = vld [vmem:[%s4249_s1 + $0x404] ss:$16 sps:$4 sm:$0xff]   ;;  %v2897_v39 = vld [vmem:[%s4249_s1 + $0x400] ss:$16 sps:$4 sm:$0xff]   ;;  %v2921_v53 = vld [vmem:[%s4249_s1 + $0xac] ss:$16 sps:$4 sm:$0xff]  }
  0x32   :  { %v2902_v38 = vld [vmem:[%s4249_s1 + $0x604] ss:$16 sps:$4 sm:$0xff]   ;;  %v2900_v40 = vld [vmem:[%s4249_s1 + $0x600] ss:$16 sps:$4 sm:$0xff]  }
  0x33   :  { %1447 = vmatpush2.bf16.msra.mxu0 %v2831_v54  ;;  %v2905_v41 = vld [vmem:[%s4249_s1 + $0x5e4] ss:$16 sps:$4 sm:$0xff]   ;;  %v2903_v43 = vld [vmem:[%s4249_s1 + $0x5e0] ss:$16 sps:$4 sm:$0xff]  }
  0x34   :  { %1488 = vmatpush2.bf16.msra.mxu1 %v2832_v55  ;;  %1448 = vmatprep.subr.bf16.mxu0 %v2833_v56  ;;  %v2912_v46 = vld [vmem:[%s4249_s1 + $0x5c4] ss:$16 sps:$4 sm:$0xff]   ;;  %v2910_v49 = vld [vmem:[%s4249_s1 + $0x5c0] ss:$16 sps:$4 sm:$0xff]   ;;  %v2919_v55 = vld [vmem:[%s4249_s1 + $0xa8] ss:$16 sps:$4 sm:$0xff]  }
  0x35   :  { %1489 = vmatprep.subr.bf16.mxu1 %v2835_v57  ;;  %v2918_v52 = vld [vmem:[%s4249_s1 + $0x5a4] ss:$16 sps:$4 sm:$0xff]   ;;  %v2916_v54 = vld [vmem:[%s4249_s1 + $0x5a0] ss:$16 sps:$4 sm:$0xff]  }
  0x36   :  { %v2924_v56 = vld [vmem:[%s4249_s1 + $0x584] ss:$16 sps:$4 sm:$0xff]   ;;  %v2922_v57 = vld [vmem:[%s4249_s1 + $0x580] ss:$16 sps:$4 sm:$0xff]  }
  0x37   :  { %1449 = vmatpush2.bf16.msra.mxu0 %v2837_v58  ;;  %v2925_v58 = vld [vmem:[%s4249_s1 + $0x88] ss:$16 sps:$4 sm:$0xff]  }
  0x38   :  { %1490 = vmatpush2.bf16.msra.mxu1 %v2838_v59  ;;  %1450 = vmatprep.subr.bf16.mxu0 %v2839_v60  ;;  %v2930_v59 = vld [vmem:[%s4249_s1 + $0x564] ss:$16 sps:$4 sm:$0xff]   ;;  %v2933_v60 = vld [vmem:[%s4249_s1 + $0x6c] ss:$16 sps:$4 sm:$0xff]  }
  0x39   :  { %1491 = vmatprep.subr.bf16.mxu1 %v2841_v61  ;;  %v2928_v61 = vld [vmem:[%s4249_s1 + $0x560] ss:$16 sps:$4 sm:$0xff]  }
  0x3b   :  { %1451 = vmatpush2.bf16.msra.mxu0 %v2843_v62  ;;  %v2931_v62 = vld [vmem:[%s4249_s1 + $0x68] ss:$16 sps:$4 sm:$0xff]  }
  0x3c   :  { %1492 = vmatpush2.bf16.msra.mxu1 %v2844_v63  ;;  %1452 = vmatprep.subr.bf16.mxu0 %v2845_v0  ;;  %v2936_v63 = vld [vmem:[%s4249_s1 + $0x544] ss:$16 sps:$4 sm:$0xff]   ;;  %v2939_v0 = vld [vmem:[%s4249_s1 + $0x4c] ss:$16 sps:$4 sm:$0xff]  }
  0x3d   :  { %1493 = vmatprep.subr.bf16.mxu1 %v2847_v1  ;;  %v2934_v1 = vld [vmem:[%s4249_s1 + $0x540] ss:$16 sps:$4 sm:$0xff]  }
  0x3f   :  { %1453 = vmatpush2.bf16.msra.mxu0 %v2849_v2  ;;  %v2937_v2 = vld [vmem:[%s4249_s1 + $0x48] ss:$16 sps:$4 sm:$0xff]  }
  0x40   :  { %1494 = vmatpush2.bf16.msra.mxu1 %v2850_v3  ;;  %1504 = vmatprep.subr.bf16.mxu0 %v2857_v4  ;;  %v2942_v3 = vld [vmem:[%s4249_s1 + $0x524] ss:$16 sps:$4 sm:$0xff]   ;;  %v2945_v4 = vld [vmem:[%s4249_s1 + $0x2c] ss:$16 sps:$4 sm:$0xff]  }
  0x41   :  { %1545 = vmatprep.subr.bf16.mxu1 %v2860_v5  ;;  %v2940_v5 = vld [vmem:[%s4249_s1 + $0x520] ss:$16 sps:$4 sm:$0xff]  }
  0x42   :  { %1455 = vmatmul.mubr.bf16.vlgmr.msra.gmra.mxu0 %v3461_v6 }
  0x43   :  { %1496 = vmatmul.mubr.bf16.vlgmr.msra.gmra.mxu1 %v3463_v7  ;;  %1505 = vmatpush1.bf16.msra.mxu0 %v2855_v8  ;;  %v2943_v8 = vld [vmem:[%s4249_s1 + $0x28] ss:$16 sps:$4 sm:$0xff]  }
  0x44   :  { %1546 = vmatpush1.bf16.msra.mxu1 %v2858_v9  ;;  %1506 = vmatprep.subr.bf16.mxu0 %v2863_v10  ;;  %v2948_v9 = vld [vmem:[%s4249_s1 + $0x504] ss:$16 sps:$4 sm:$0xff]   ;;  %v2951_v10 = vld [vmem:[%s4249_s1 + $0xc] ss:$16 sps:$4 sm:$0xff]  }
  0x45   :  { %1547 = vmatprep.subr.bf16.mxu1 %v2866_v11  ;;  %1577 = vmatprep.mubr.bf16.mxu1 %v3210_v16  ;;  %v2946_v11 = vld [vmem:[%s4249_s1 + $0x500] ss:$16 sps:$4 sm:$0xff]  }
  0x46   :  { %1536 = vmatprep.mubr.bf16.mxu0 %v3550_v35 }
  0x47   :  { %1507 = vmatpush1.bf16.msra.mxu0 %v2861_v12  ;;  %v2949_v12 = vld [vmem:[%s4249_s1 + $0x8] ss:$16 sps:$4 sm:$0xff]  }
  0x48   :  { %1548 = vmatpush1.bf16.msra.mxu1 %v2864_v13  ;;  %1508 = vmatprep.subr.bf16.mxu0 %v2869_v14  ;;  %v2956_v13 = vld [vmem:[%s4249_s1 + $0x1ec] ss:$16 sps:$4 sm:$0xff]  }
  0x49   :  { %1549 = vmatprep.subr.bf16.mxu1 %v2872_v15  ;;  %v2959_v14 = vld [vmem:[%s4249_s1 + $0x2ec] ss:$16 sps:$4 sm:$0xff]   ;;  %v3679_v15 = vcombine.low %v3543_v33, %v3543_v33  ;;  %v2981_v33 = vld [vmem:[%s4249_s1 + $0x268] ss:$16 sps:$4 sm:$0xff]  }
  0x4b   :  { %1509 = vmatpush1.bf16.msra.mxu0 %v2867_v17  ;;  %v2954_v17 = vld [vmem:[%s4249_s1 + $0x1e8] ss:$16 sps:$4 sm:$0xff]  }
  0x4c   :  { %1550 = vmatpush1.bf16.msra.mxu1 %v2870_v18  ;;  %1510 = vmatprep.subr.bf16.mxu0 %v2875_v19  ;;  %v2957_v18 = vld [vmem:[%s4249_s1 + $0x2e8] ss:$16 sps:$4 sm:$0xff]   ;;  %v2962_v19 = vld [vmem:[%s4249_s1 + $0x1cc] ss:$16 sps:$4 sm:$0xff]  }
  0x4d   :  { %1551 = vmatprep.subr.bf16.mxu1 %v2878_v20  ;;  %v2965_v20 = vld [vmem:[%s4249_s1 + $0x2cc] ss:$16 sps:$4 sm:$0xff]  }
  0x4f   :  { %1511 = vmatpush1.bf16.msra.mxu0 %v2873_v21  ;;  %v2960_v21 = vld [vmem:[%s4249_s1 + $0x1c8] ss:$16 sps:$4 sm:$0xff]  }
  0x50   :  { %1552 = vmatpush1.bf16.msra.mxu1 %v2876_v22  ;;  %1512 = vmatprep.subr.bf16.mxu0 %v2881_v23  ;;  %v2963_v22 = vld [vmem:[%s4249_s1 + $0x2c8] ss:$16 sps:$4 sm:$0xff]   ;;  %v2968_v23 = vld [vmem:[%s4249_s1 + $0x1ac] ss:$16 sps:$4 sm:$0xff]  }
  0x51   :  { %1553 = vmatprep.subr.bf16.mxu1 %v2884_v24  ;;  %v2971_v24 = vld [vmem:[%s4249_s1 + $0x2ac] ss:$16 sps:$4 sm:$0xff]  }
  0x53   :  { %1513 = vmatpush1.bf16.msra.mxu0 %v2879_v25  ;;  %v2966_v25 = vld [vmem:[%s4249_s1 + $0x1a8] ss:$16 sps:$4 sm:$0xff]  }
  0x54   :  { %1554 = vmatpush1.bf16.msra.mxu1 %v2882_v26  ;;  %1514 = vmatprep.subr.bf16.mxu0 %v2887_v27  ;;  %v2969_v26 = vld [vmem:[%s4249_s1 + $0x2a8] ss:$16 sps:$4 sm:$0xff]   ;;  %v2974_v27 = vld [vmem:[%s4249_s1 + $0x18c] ss:$16 sps:$4 sm:$0xff]  }
  0x55   :  { %1555 = vmatprep.subr.bf16.mxu1 %v2890_v28  ;;  %v2972_v28 = vld [vmem:[%s4249_s1 + $0x188] ss:$16 sps:$4 sm:$0xff]  }
  0x57   :  { %1515 = vmatpush1.bf16.msra.mxu0 %v2885_v29  ;;  %v2975_v29 = vld [vmem:[%s4249_s1 + $0x288] ss:$16 sps:$4 sm:$0xff]  }
  0x58   :  { %1556 = vmatpush1.bf16.msra.mxu1 %v2888_v30  ;;  %1516 = vmatprep.subr.bf16.mxu0 %v2893_v31  ;;  %v2980_v30 = vld [vmem:[%s4249_s1 + $0x16c] ss:$16 sps:$4 sm:$0xff]  }
  0x59   :  { %1557 = vmatprep.subr.bf16.mxu1 %v2896_v32  ;;  %v2983_v31 = vld [vmem:[%s4249_s1 + $0x26c] ss:$16 sps:$4 sm:$0xff]   ;;  %v2978_v32 = vld [vmem:[%s4249_s1 + $0x168] ss:$16 sps:$4 sm:$0xff]  }
  0x5b   :  { %1517 = vmatpush1.bf16.msra.mxu0 %v2891_v34  ;;  %v2986_v34 = vld [vmem:[%s4249_s1 + $0x14c] ss:$16 sps:$4 sm:$0xff]  }
  0x5c   :  { %1558 = vmatpush1.bf16.msra.mxu1 %v2894_v36  ;;  %1518 = vmatprep.subr.bf16.mxu0 %v2899_v37  ;;  %v2989_v36 = vld [vmem:[%s4249_s1 + $0x24c] ss:$16 sps:$4 sm:$0xff]   ;;  %v2984_v37 = vld [vmem:[%s4249_s1 + $0x148] ss:$16 sps:$4 sm:$0xff]  }
  0x5d   :  { %1559 = vmatprep.subr.bf16.mxu1 %v2902_v38  ;;  %v2987_v38 = vld [vmem:[%s4249_s1 + $0x248] ss:$16 sps:$4 sm:$0xff]  }
  0x5f   :  { %1519 = vmatpush1.bf16.msra.mxu0 %v2897_v39  ;;  %v2992_v39 = vld [vmem:[%s4249_s1 + $0x12c] ss:$16 sps:$4 sm:$0xff]  }
  0x60   :  { %1560 = vmatpush1.bf16.msra.mxu1 %v2900_v40  ;;  %1520 = vmatprep.subr.bf16.mxu0 %v2905_v41  ;;  %v2995_v40 = vld [vmem:[%s4249_s1 + $0x22c] ss:$16 sps:$4 sm:$0xff]   ;;  %v2990_v41 = vld [vmem:[%s4249_s1 + $0x128] ss:$16 sps:$4 sm:$0xff]  }
  0x61   :  { %1586 = vmatprep.subr.bf16.mxu1 %v2909_v42  ;;  %v2993_v42 = vld [vmem:[%s4249_s1 + $0x228] ss:$16 sps:$4 sm:$0xff]  }
  0x63   :  { %1578 = vmatmul.mubr.bf16.vlgmr.msra.gmra.mxu1 %v3580_v44  ;;  %1521 = vmatpush2.bf16.msra.mxu0 %v2903_v43  ;;  %v2998_v43 = vld [vmem:[%s4249_s1 + $0x10c] ss:$16 sps:$4 sm:$0xff]  }
  0x64   :  { %1587 = vmatpush1.bf16.msra.mxu1 %v2907_v45  ;;  %1522 = vmatprep.subr.bf16.mxu0 %v2912_v46  ;;  %v3001_v45 = vld [vmem:[%s4249_s1 + $0x20c] ss:$16 sps:$4 sm:$0xff]   ;;  %v2996_v46 = vld [vmem:[%s4249_s1 + $0x108] ss:$16 sps:$4 sm:$0xff]  }
  0x65   :  { %1588 = vmatprep.subr.bf16.mxu1 %v2915_v48  ;;  %1618 = vmatprep.mubr.bf16.mxu1 %v3392_v47  ;;  %v2927_v47 = vld [vmem:[%s4249_s1 + $0x8c] ss:$16 sps:$4 sm:$0xff]   ;;  %v2999_v48 = vld [vmem:[%s4249_s1 + $0x208] ss:$16 sps:$4 sm:$0xff]  }
  0x67   :  { %1523 = vmatpush2.bf16.msra.mxu0 %v2910_v49  ;;  %v3004_v49 = vld [vmem:[%s4249_s1 + $0x3ec] ss:$16 sps:$4 sm:$0xff]  }
  0x68   :  { %1589 = vmatpush1.bf16.msra.mxu1 %v2913_v50  ;;  %1524 = vmatprep.subr.bf16.mxu0 %v2918_v52  ;;  %v3007_v50 = vld [vmem:[%s4249_s1 + $0x4ec] ss:$16 sps:$4 sm:$0xff]   ;;  %v3002_v52 = vld [vmem:[%s4249_s1 + $0x3e8] ss:$16 sps:$4 sm:$0xff]  }
  0x69   :  { %1590 = vmatprep.subr.bf16.mxu1 %v2921_v53  ;;  %v3005_v53 = vld [vmem:[%s4249_s1 + $0x4e8] ss:$16 sps:$4 sm:$0xff]  }
  0x6b   :  { %1525 = vmatpush2.bf16.msra.mxu0 %v2916_v54  ;;  %v3010_v54 = vld [vmem:[%s4249_s1 + $0x3cc] ss:$16 sps:$4 sm:$0xff]  }
  0x6c   :  { %1591 = vmatpush1.bf16.msra.mxu1 %v2919_v55  ;;  %1526 = vmatprep.subr.bf16.mxu0 %v2924_v56  ;;  %v3013_v55 = vld [vmem:[%s4249_s1 + $0x4cc] ss:$16 sps:$4 sm:$0xff]   ;;  %v3008_v56 = vld [vmem:[%s4249_s1 + $0x3c8] ss:$16 sps:$4 sm:$0xff]  }
  0x6d   :  { %1592 = vmatprep.subr.bf16.mxu1 %v2927_v47  ;;  %v3011_v47 = vld [vmem:[%s4249_s1 + $0x4c8] ss:$16 sps:$4 sm:$0xff]  }
  0x6f   :  { %1527 = vmatpush2.bf16.msra.mxu0 %v2922_v57  ;;  %v3016_v57 = vld [vmem:[%s4249_s1 + $0x3ac] ss:$16 sps:$4 sm:$0xff]  }
  0x70   :  { %1593 = vmatpush1.bf16.msra.mxu1 %v2925_v58  ;;  %1528 = vmatprep.subr.bf16.mxu0 %v2930_v59  ;;  %v3019_v58 = vld [vmem:[%s4249_s1 + $0x4ac] ss:$16 sps:$4 sm:$0xff]   ;;  %v3014_v59 = vld [vmem:[%s4249_s1 + $0x3a8] ss:$16 sps:$4 sm:$0xff]  }
  0x71   :  { %1594 = vmatprep.subr.bf16.mxu1 %v2933_v60  ;;  %v3022_v60 = vld [vmem:[%s4249_s1 + $0x38c] ss:$16 sps:$4 sm:$0xff]  }
  0x73   :  { %1529 = vmatpush2.bf16.msra.mxu0 %v2928_v61  ;;  %v3025_v61 = vld [vmem:[%s4249_s1 + $0x48c] ss:$16 sps:$4 sm:$0xff]  }
  0x74   :  { %1595 = vmatpush1.bf16.msra.mxu1 %v2931_v62  ;;  %1530 = vmatprep.subr.bf16.mxu0 %v2936_v63  ;;  %v3020_v62 = vld [vmem:[%s4249_s1 + $0x388] ss:$16 sps:$4 sm:$0xff]   ;;  %v3028_v63 = vld [vmem:[%s4249_s1 + $0x36c] ss:$16 sps:$4 sm:$0xff]  }
  0x75   :  { %1596 = vmatprep.subr.bf16.mxu1 %v2939_v0  ;;  %v3031_v0 = vld [vmem:[%s4249_s1 + $0x46c] ss:$16 sps:$4 sm:$0xff]  }
  0x77   :  { %1531 = vmatpush2.bf16.msra.mxu0 %v2934_v1  ;;  %v3026_v1 = vld [vmem:[%s4249_s1 + $0x368] ss:$16 sps:$4 sm:$0xff]  }
  0x78   :  { %1597 = vmatpush1.bf16.msra.mxu1 %v2937_v2  ;;  %1532 = vmatprep.subr.bf16.mxu0 %v2942_v3  ;;  %v3029_v2 = vld [vmem:[%s4249_s1 + $0x468] ss:$16 sps:$4 sm:$0xff]   ;;  %v3034_v3 = vld [vmem:[%s4249_s1 + $0x34c] ss:$16 sps:$4 sm:$0xff]  }
  0x79   :  { %1598 = vmatprep.subr.bf16.mxu1 %v2945_v4  ;;  %v3037_v4 = vld [vmem:[%s4249_s1 + $0x44c] ss:$16 sps:$4 sm:$0xff]  }
  0x7b   :  { %1533 = vmatpush2.bf16.msra.mxu0 %v2940_v5  ;;  %v3032_v5 = vld [vmem:[%s4249_s1 + $0x348] ss:$16 sps:$4 sm:$0xff]  }
  0x7c   :  { %1599 = vmatpush1.bf16.msra.mxu1 %v2943_v8  ;;  %1534 = vmatprep.subr.bf16.mxu0 %v2948_v9  ;;  %v3035_v8 = vld [vmem:[%s4249_s1 + $0x448] ss:$16 sps:$4 sm:$0xff]   ;;  %v3040_v9 = vld [vmem:[%s4249_s1 + $0x32c] ss:$16 sps:$4 sm:$0xff]  }
  0x7d   :  { %1600 = vmatprep.subr.bf16.mxu1 %v2951_v10  ;;  %v3043_v10 = vld [vmem:[%s4249_s1 + $0x42c] ss:$16 sps:$4 sm:$0xff]  }
  0x7f   :  { %1535 = vmatpush2.bf16.msra.mxu0 %v2946_v11  ;;  %v3038_v11 = vld [vmem:[%s4249_s1 + $0x328] ss:$16 sps:$4 sm:$0xff]  }
  0x80   :  { %1601 = vmatpush1.bf16.msra.mxu1 %v2949_v12  ;;  %1627 = vmatprep.subr.bf16.mxu0 %v2959_v14  ;;  %v3041_v12 = vld [vmem:[%s4249_s1 + $0x428] ss:$16 sps:$4 sm:$0xff]   ;;  %v3049_v14 = vld [vmem:[%s4249_s1 + $0x40c] ss:$16 sps:$4 sm:$0xff]  }
  0x81   :  { %1602 = vmatprep.subr.bf16.mxu1 %v2956_v13  ;;  %v3046_v13 = vld [vmem:[%s4249_s1 + $0x30c] ss:$16 sps:$4 sm:$0xff]  }
  0x82   :  { %1537 = vmatmul.mubr.bf16.vlgmr.msra.gmra.mxu0 %v3679_v15 }
  0x83   :  { %1628 = vmatpush1.bf16.msra.mxu0 %v2957_v18  ;;  %1659 = vmatprep.mubr.bf16.mxu0 %v3403_v51  ;;  %v2977_v51 = vld [vmem:[%s4249_s1 + $0x28c] ss:$16 sps:$4 sm:$0xff]   ;;  %v3047_v18 = vld [vmem:[%s4249_s1 + $0x408] ss:$16 sps:$4 sm:$0xff]  }
  0x84   :  { %1603 = vmatpush2.bf16.msra.mxu1 %v2954_v17  ;;  %1629 = vmatprep.subr.bf16.mxu0 %v2965_v20  ;;  %v3044_v17 = vld [vmem:[%s4249_s1 + $0x308] ss:$16 sps:$4 sm:$0xff]   ;;  %v3055_v20 = vld [vmem:[%s4249_s1 + $0x6ec] ss:$16 sps:$4 sm:$0xff]  }
  0x85   :  { %1604 = vmatprep.subr.bf16.mxu1 %v2962_v19  ;;  %v3052_v19 = vld [vmem:[%s4249_s1 + $0x5ec] ss:$16 sps:$4 sm:$0xff]  }
  0x87   :  { %1630 = vmatpush1.bf16.msra.mxu0 %v2963_v22  ;;  %v3053_v22 = vld [vmem:[%s4249_s1 + $0x6e8] ss:$16 sps:$4 sm:$0xff]  }
  0x88   :  { %1605 = vmatpush2.bf16.msra.mxu1 %v2960_v21  ;;  %1631 = vmatprep.subr.bf16.mxu0 %v2971_v24  ;;  %v3050_v21 = vld [vmem:[%s4249_s1 + $0x5e8] ss:$16 sps:$4 sm:$0xff]   ;;  %v3061_v24 = vld [vmem:[%s4249_s1 + $0x6cc] ss:$16 sps:$4 sm:$0xff]  }
  0x89   :  { %1606 = vmatprep.subr.bf16.mxu1 %v2968_v23  ;;  %v3058_v23 = vld [vmem:[%s4249_s1 + $0x5cc] ss:$16 sps:$4 sm:$0xff]  }
  0x8b   :  { %1632 = vmatpush1.bf16.msra.mxu0 %v2969_v26  ;;  %v3059_v26 = vld [vmem:[%s4249_s1 + $0x6c8] ss:$16 sps:$4 sm:$0xff]  }
  0x8c   :  { %1607 = vmatpush2.bf16.msra.mxu1 %v2966_v25  ;;  %1633 = vmatprep.subr.bf16.mxu0 %v2977_v51  ;;  %v3056_v25 = vld [vmem:[%s4249_s1 + $0x5c8] ss:$16 sps:$4 sm:$0xff]  }
  0x8d   :  { %1608 = vmatprep.subr.bf16.mxu1 %v2974_v27  ;;  %v3064_v27 = vld [vmem:[%s4249_s1 + $0x5ac] ss:$16 sps:$4 sm:$0xff]   ;;  %v3062_v51 = vld [vmem:[%s4249_s1 + $0x5a8] ss:$16 sps:$4 sm:$0xff]  }
  0x8f   :  { %1634 = vmatpush1.bf16.msra.mxu0 %v2975_v29  ;;  %v3070_v29 = vld [vmem:[%s4249_s1 + $0x58c] ss:$16 sps:$4 sm:$0xff]  }
  0x90   :  { %1609 = vmatpush2.bf16.msra.mxu1 %v2972_v28  ;;  %1635 = vmatprep.subr.bf16.mxu0 %v2983_v31  ;;  %v3065_v28 = vld [vmem:[%s4249_s1 + $0x6a8] ss:$16 sps:$4 sm:$0xff]  }
  0x91   :  { %1610 = vmatprep.subr.bf16.mxu1 %v2980_v30  ;;  %v3068_v30 = vld [vmem:[%s4249_s1 + $0x588] ss:$16 sps:$4 sm:$0xff]  }
  0x92   :  { %v3071_v31 = vld [vmem:[%s4249_s1 + $0x688] ss:$16 sps:$4 sm:$0xff]  }
  0x93   :  { %1636 = vmatpush1.bf16.msra.mxu0 %v2981_v33  ;;  %v3079_v33 = vld [vmem:[%s4249_s1 + $0x66c] ss:$16 sps:$4 sm:$0xff]  }
  0x94   :  { %1611 = vmatpush2.bf16.msra.mxu1 %v2978_v32  ;;  %1637 = vmatprep.subr.bf16.mxu0 %v2989_v36  ;;  %v3076_v32 = vld [vmem:[%s4249_s1 + $0x56c] ss:$16 sps:$4 sm:$0xff]   ;;  %v3077_v36 = vld [vmem:[%s4249_s1 + $0x668] ss:$16 sps:$4 sm:$0xff]  }
  0x95   :  { %1612 = vmatprep.subr.bf16.mxu1 %v2986_v34  ;;  %v3074_v34 = vld [vmem:[%s4249_s1 + $0x568] ss:$16 sps:$4 sm:$0xff]  }
  0x97   :  { %1638 = vmatpush1.bf16.msra.mxu0 %v2987_v38  ;;  %v3085_v38 = vld [vmem:[%s4249_s1 + $0x64c] ss:$16 sps:$4 sm:$0xff]  }
  0x98   :  { %1613 = vmatpush2.bf16.msra.mxu1 %v2984_v37  ;;  %1639 = vmatprep.subr.bf16.mxu0 %v2995_v40  ;;  %v3082_v37 = vld [vmem:[%s4249_s1 + $0x54c] ss:$16 sps:$4 sm:$0xff]   ;;  %v3083_v40 = vld [vmem:[%s4249_s1 + $0x648] ss:$16 sps:$4 sm:$0xff]  }
  0x99   :  { %1614 = vmatprep.subr.bf16.mxu1 %v2992_v39  ;;  %v3080_v39 = vld [vmem:[%s4249_s1 + $0x548] ss:$16 sps:$4 sm:$0xff]  }
  0x9b   :  { %1640 = vmatpush1.bf16.msra.mxu0 %v2993_v42  ;;  %v3091_v42 = vld [vmem:[%s4249_s1 + $0x62c] ss:$16 sps:$4 sm:$0xff]  }
  0x9c   :  { %1615 = vmatpush2.bf16.msra.mxu1 %v2990_v41  ;;  %1641 = vmatprep.subr.bf16.mxu0 %v3001_v45  ;;  %v3088_v41 = vld [vmem:[%s4249_s1 + $0x52c] ss:$16 sps:$4 sm:$0xff]   ;;  %v3089_v45 = vld [vmem:[%s4249_s1 + $0x628] ss:$16 sps:$4 sm:$0xff]  }
  0x9d   :  { %1616 = vmatprep.subr.bf16.mxu1 %v2998_v43  ;;  %v3086_v43 = vld [vmem:[%s4249_s1 + $0x528] ss:$16 sps:$4 sm:$0xff]  }
  0x9f   :  { %1642 = vmatpush1.bf16.msra.mxu0 %v2999_v48  ;;  %v3097_v48 = vld [vmem:[%s4249_s1 + $0x60c] ss:$16 sps:$4 sm:$0xff]  }
  0xa0   :  { %1617 = vmatpush2.bf16.msra.mxu1 %v2996_v46  ;;  %1643 = vmatprep.subr.bf16.mxu0 %v3004_v49  ;;  %v3094_v46 = vld [vmem:[%s4249_s1 + $0x50c] ss:$16 sps:$4 sm:$0xff]   ;;  %v3092_v49 = vld [vmem:[%s4249_s1 + $0x508] ss:$16 sps:$4 sm:$0xff]  }
  0xa1   :  { %1668 = vmatprep.subr.bf16.mxu1 %v3007_v50  ;;  %v3095_v50 = vld [vmem:[%s4249_s1 + $0x608] ss:$16 sps:$4 sm:$0xff]  }
  0xa3   :  { %1619 = vmatmul.mubr.bf16.vlgmr.msra.gmra.mxu1 %v3461_v6  ;;  %1644 = vmatpush2.bf16.msra.mxu0 %v3002_v52  ;;  %v3017_v6 = vld [vmem:[%s4249_s1 + $0x4a8] ss:$16 sps:$4 sm:$0xff]   ;;  %v3100_v52 = vld [vmem:[%s4251_s3 + $0x74] ss:$8 sps:$4 sm:$0xff]  }
  0xa4   :  { %1669 = vmatpush1.bf16.msra.mxu1 %v3005_v53  ;;  %1645 = vmatprep.subr.bf16.mxu0 %v3010_v54  ;;  %v3098_v53 = vld [vmem:[%s4251_s3 + $0x70] ss:$8 sps:$4 sm:$0xff]   ;;  %v3103_v54 = vld [vmem:[%s4251_s3 + $0x64] ss:$8 sps:$4 sm:$0xff]  }
  0xa5   :  { %1670 = vmatprep.subr.bf16.mxu1 %v3013_v55  ;;  %1700 = vmatprep.mubr.bf16.mxu1 %v3550_v35  ;;  %v3023_v35 = vld [vmem:[%s4249_s1 + $0x488] ss:$16 sps:$4 sm:$0xff]  }
  0xa6   :  { %v3101_v55 = vld [vmem:[%s4251_s3 + $0x60] ss:$8 sps:$4 sm:$0xff]  }
  0xa7   :  { %1646 = vmatpush2.bf16.msra.mxu0 %v3008_v56  ;;  %v3106_v56 = vld [vmem:[%s4251_s3 + $0x54] ss:$8 sps:$4 sm:$0xff]  }
  0xa8   :  { %1671 = vmatpush1.bf16.msra.mxu1 %v3011_v47  ;;  %1647 = vmatprep.subr.bf16.mxu0 %v3016_v57  ;;  %v3104_v47 = vld [vmem:[%s4251_s3 + $0x50] ss:$8 sps:$4 sm:$0xff]   ;;  %v3148_v57 = vld [vmem:[%s4251_s3 + $0x174] ss:$8 sps:$4 sm:$0xff]  }
  0xa9   :  { %1672 = vmatprep.subr.bf16.mxu1 %v3019_v58  ;;  %v3151_v58 = vld [vmem:[%s4251_s3 + $0x164] ss:$8 sps:$4 sm:$0xff]  }
  0xab   :  { %1648 = vmatpush2.bf16.msra.mxu0 %v3014_v59  ;;  %v3107_v59 = vld [vmem:[%s4251_s3 + $0x40] ss:$8 sps:$4 sm:$0xff]  }
  0xac   :  { %1673 = vmatpush1.bf16.msra.mxu1 %v3017_v6  ;;  %1649 = vmatprep.subr.bf16.mxu0 %v3022_v60  ;;  %v3149_v6 = vld [vmem:[%s4251_s3 + $0x160] ss:$8 sps:$4 sm:$0xff]   ;;  %v3112_v60 = vld [vmem:[%s4251_s3 + $0x34] ss:$8 sps:$4 sm:$0xff]  }
  0xad   :  { %1674 = vmatprep.subr.bf16.mxu1 %v3025_v61  ;;  %v3154_v61 = vld [vmem:[%s4251_s3 + $0x154] ss:$8 sps:$4 sm:$0xff]  }
  0xaf   :  { %1650 = vmatpush2.bf16.msra.mxu0 %v3020_v62  ;;  %v3110_v62 = vld [vmem:[%s4251_s3 + $0x30] ss:$8 sps:$4 sm:$0xff]  }
  0xb0   :  { %1675 = vmatpush1.bf16.msra.mxu1 %v3023_v35  ;;  %1651 = vmatprep.subr.bf16.mxu0 %v3028_v63  ;;  %v3152_v35 = vld [vmem:[%s4251_s3 + $0x150] ss:$8 sps:$4 sm:$0xff]   ;;  %v3115_v63 = vld [vmem:[%s4251_s3 + $0x24] ss:$8 sps:$4 sm:$0xff]  }
  0xb1   :  { %1676 = vmatprep.subr.bf16.mxu1 %v3031_v0  ;;  %v3157_v0 = vld [vmem:[%s4251_s3 + $0x144] ss:$8 sps:$4 sm:$0xff]  }
  0xb3   :  { %1652 = vmatpush2.bf16.msra.mxu0 %v3026_v1  ;;  %v3113_v1 = vld [vmem:[%s4251_s3 + $0x20] ss:$8 sps:$4 sm:$0xff]  }
  0xb4   :  { %1677 = vmatpush1.bf16.msra.mxu1 %v3029_v2  ;;  %1653 = vmatprep.subr.bf16.mxu0 %v3034_v3  ;;  %v3155_v2 = vld [vmem:[%s4251_s3 + $0x140] ss:$8 sps:$4 sm:$0xff]   ;;  %v3118_v3 = vld [vmem:[%s4251_s3 + $0x14] ss:$8 sps:$4 sm:$0xff]  }
  0xb5   :  { %1678 = vmatprep.subr.bf16.mxu1 %v3037_v4  ;;  %v3160_v4 = vld [vmem:[%s4251_s3 + $0x134] ss:$8 sps:$4 sm:$0xff]  }
  0xb7   :  { %1654 = vmatpush2.bf16.msra.mxu0 %v3032_v5  ;;  %v3116_v5 = vld [vmem:[%s4251_s3 + $0x10] ss:$8 sps:$4 sm:$0xff]  }
  0xb8   :  { %1679 = vmatpush1.bf16.msra.mxu1 %v3035_v8  ;;  %1655 = vmatprep.subr.bf16.mxu0 %v3040_v9  ;;  %v3158_v8 = vld [vmem:[%s4251_s3 + $0x130] ss:$8 sps:$4 sm:$0xff]   ;;  %v3121_v9 = vld [vmem:[%s4251_s3 + $0x4] ss:$8 sps:$4 sm:$0xff]  }
  0xb9   :  { %1680 = vmatprep.subr.bf16.mxu1 %v3043_v10  ;;  %v3119_v10 = vld [vmem:[%s4251_s3] ss:$8 sps:$4 sm:$0xff]  }
  0xbb   :  { %1656 = vmatpush2.bf16.msra.mxu0 %v3038_v11  ;;  %v3124_v11 = vld [vmem:[%s4251_s3 + $0xf4] ss:$8 sps:$4 sm:$0xff]  }
  0xbc   :  { %1681 = vmatpush1.bf16.msra.mxu1 %v3041_v12  ;;  %1657 = vmatprep.subr.bf16.mxu0 %v3046_v13  ;;  %v3122_v12 = vld [vmem:[%s4251_s3 + $0xf0] ss:$8 sps:$4 sm:$0xff]   ;;  %v3127_v13 = vld [vmem:[%s4251_s3 + $0xe4] ss:$8 sps:$4 sm:$0xff]  }
  0xbd   :  { %1682 = vmatprep.subr.bf16.mxu1 %v3049_v14  ;;  %v3163_v14 = vld [vmem:[%s4251_s3 + $0x124] ss:$8 sps:$4 sm:$0xff]  }
  0xbf   :  { %1658 = vmatpush2.bf16.msra.mxu0 %v3044_v17  ;;  %v3161_v17 = vld [vmem:[%s4251_s3 + $0x120] ss:$8 sps:$4 sm:$0xff]  }
  0xc0   :  { %1683 = vmatpush1.bf16.msra.mxu1 %v3047_v18  ;;  %1709 = vmatprep.subr.bf16.mxu0 %v3055_v20  ;;  %v3125_v20 = vld [vmem:[%s4251_s3 + $0xe0] ss:$8 sps:$4 sm:$0xff]  }
  0xc1   :  { %1684 = vmatprep.subr.bf16.mxu1 %v3052_v19 }
  0xc2   :  { %1660 = vmatmul.mubr.bf16.vlgmr.msra.gmra.mxu0 %v3463_v7  ;;  %v3067_v7 = vld [vmem:[%s4249_s1 + $0x6ac] ss:$16 sps:$4 sm:$0xff]  }
  0xc3   :  { %1710 = vmatpush1.bf16.msra.mxu0 %v3053_v22  ;;  %1741 = vmatprep.mubr.bf16.mxu0 %v3210_v16  ;;  %v3073_v16 = vld [vmem:[%s4249_s1 + $0x68c] ss:$16 sps:$4 sm:$0xff]  }
  0xc4   :  { %1685 = vmatpush2.bf16.msra.mxu1 %v3050_v21  ;;  %1711 = vmatprep.subr.bf16.mxu0 %v3061_v24  ;;  %v3166_v24 = vld [vmem:[%s4251_s3 + $0x114] ss:$8 sps:$4 sm:$0xff]  }
  0xc5   :  { %1686 = vmatprep.subr.bf16.mxu1 %v3058_v23  ;;  %v3130_v23 = vld [vmem:[%s4251_s3 + $0xd4] ss:$8 sps:$4 sm:$0xff]  }
  0xc7   :  { %1712 = vmatpush1.bf16.msra.mxu0 %v3059_v26 }
  0xc8   :  { %1687 = vmatpush2.bf16.msra.mxu1 %v3056_v25  ;;  %1713 = vmatprep.subr.bf16.mxu0 %v3067_v7  ;;  %v3164_v25 = vld [vmem:[%s4251_s3 + $0x110] ss:$8 sps:$4 sm:$0xff]  }
  0xc9   :  { %1688 = vmatprep.subr.bf16.mxu1 %v3064_v27  ;;  %v3128_v7 = vld [vmem:[%s4251_s3 + $0xd0] ss:$8 sps:$4 sm:$0xff]  }
  0xcb   :  { %1714 = vmatpush1.bf16.msra.mxu0 %v3065_v28 }
  0xcc   :  { %1689 = vmatpush2.bf16.msra.mxu1 %v3062_v51  ;;  %1715 = vmatprep.subr.bf16.mxu0 %v3073_v16  ;;  %v3167_v16 = vld [vmem:[%s4251_s3 + $0x100] ss:$8 sps:$4 sm:$0xff]  }
  0xcd   :  { %1690 = vmatprep.subr.bf16.mxu1 %v3070_v29  ;;  %v3133_v29 = vld [vmem:[%s4251_s3 + $0xc4] ss:$8 sps:$4 sm:$0xff]  }
  0xcf   :  { %1716 = vmatpush1.bf16.msra.mxu0 %v3071_v31  ;;  %v3172_v31 = vld [vmem:[%s4251_s3 + $0x1f4] ss:$8 sps:$4 sm:$0xff]  }
  0xd0   :  { %1691 = vmatpush2.bf16.msra.mxu1 %v3068_v30  ;;  %1717 = vmatprep.subr.bf16.mxu0 %v3079_v33  ;;  %v3169_v30 = vld [vmem:[%s4251_s3 + $0x104] ss:$8 sps:$4 sm:$0xff]   ;;  %v3170_v33 = vld [vmem:[%s4251_s3 + $0x1f0] ss:$8 sps:$4 sm:$0xff]  }
  0xd1   :  { %1692 = vmatprep.subr.bf16.mxu1 %v3076_v32  ;;  %v3131_v32 = vld [vmem:[%s4251_s3 + $0xc0] ss:$8 sps:$4 sm:$0xff]  }
  0xd3   :  { %1718 = vmatpush1.bf16.msra.mxu0 %v3077_v36  ;;  %v3175_v36 = vld [vmem:[%s4251_s3 + $0x1e4] ss:$8 sps:$4 sm:$0xff]  }
  0xd4   :  { %1693 = vmatpush2.bf16.msra.mxu1 %v3074_v34  ;;  %1719 = vmatprep.subr.bf16.mxu0 %v3085_v38  ;;  %v3136_v34 = vld [vmem:[%s4251_s3 + $0xb4] ss:$8 sps:$4 sm:$0xff]   ;;  %v3173_v38 = vld [vmem:[%s4251_s3 + $0x1e0] ss:$8 sps:$4 sm:$0xff]  }
  0xd5   :  { %1694 = vmatprep.subr.bf16.mxu1 %v3082_v37  ;;  %v3134_v37 = vld [vmem:[%s4251_s3 + $0xb0] ss:$8 sps:$4 sm:$0xff]  }
  0xd7   :  { %1720 = vmatpush1.bf16.msra.mxu0 %v3083_v40  ;;  %v3178_v40 = vld [vmem:[%s4251_s3 + $0x1d4] ss:$8 sps:$4 sm:$0xff]  }
  0xd8   :  { %1695 = vmatpush2.bf16.msra.mxu1 %v3080_v39  ;;  %1721 = vmatprep.subr.bf16.mxu0 %v3091_v42  ;;  %v3139_v39 = vld [vmem:[%s4251_s3 + $0xa4] ss:$8 sps:$4 sm:$0xff]   ;;  %v3176_v42 = vld [vmem:[%s4251_s3 + $0x1d0] ss:$8 sps:$4 sm:$0xff]  }
  0xd9   :  { %1696 = vmatprep.subr.bf16.mxu1 %v3088_v41  ;;  %v3137_v41 = vld [vmem:[%s4251_s3 + $0xa0] ss:$8 sps:$4 sm:$0xff]  }
  0xdb   :  { %1722 = vmatpush1.bf16.msra.mxu0 %v3089_v45  ;;  %v3181_v45 = vld [vmem:[%s4251_s3 + $0x1c4] ss:$8 sps:$4 sm:$0xff]  }
  0xdc   :  { %1697 = vmatpush2.bf16.msra.mxu1 %v3086_v43  ;;  %1723 = vmatprep.subr.bf16.mxu0 %v3097_v48  ;;  %v3142_v43 = vld [vmem:[%s4251_s3 + $0x94] ss:$8 sps:$4 sm:$0xff]   ;;  %v3179_v48 = vld [vmem:[%s4251_s3 + $0x1c0] ss:$8 sps:$4 sm:$0xff]  }
  0xdd   :  { %1698 = vmatprep.subr.bf16.mxu1 %v3094_v46  ;;  %v3140_v46 = vld [vmem:[%s4251_s3 + $0x90] ss:$8 sps:$4 sm:$0xff]  }
  0xdf   :  { %1724 = vmatpush1.bf16.msra.mxu0 %v3095_v50  ;;  %v3184_v50 = vld [vmem:[%s4251_s3 + $0x1b4] ss:$8 sps:$4 sm:$0xff]  }
  0xe0   :  { %1699 = vmatpush2.bf16.msra.mxu1 %v3092_v49  ;;  %2154 = vmatprep.subr.bf16.mxu0 %v3100_v52  ;;  %v3145_v49 = vld [vmem:[%s4251_s3 + $0x84] ss:$8 sps:$4 sm:$0xff]   ;;  %v3143_v52 = vld [vmem:[%s4251_s3 + $0x80] ss:$8 sps:$4 sm:$0xff]  }
  0xe1   :  { %2195 = vmatprep.subr.bf16.mxu1 %v3148_v57 }
  0xe2   :  { %1742 = vmatmul.mubr.bf16.vlgmr.msra.gmra.mxu0 %v3580_v44  ;;  %v3109_v44 = vld [vmem:[%s4251_s3 + $0x44] ss:$8 sps:$4 sm:$0xff]  }
  0xe3   :  { %1701 = vmatmul.mubr.bf16.vlgmr.msra.gmra.mxu1 %v3679_v15  ;;  %2155 = vmatpush1.bf16.msra.mxu0 %v3098_v53  ;;  %v3146_v15 = vld [vmem:[%s4251_s3 + $0x170] ss:$8 sps:$4 sm:$0xff]  }
  0xe4   :  { %2156 = vmatprep.subr.bf16.mxu0 %v3103_v54  ;;  %2196 = vmatpush1.bf16.msra.mxu1 %v3146_v15  ;;  %v3182_v53 = vld [vmem:[%s4251_s3 + $0x1b0] ss:$8 sps:$4 sm:$0xff]   ;;  %v3187_v54 = vld [vmem:[%s4251_s3 + $0x1a4] ss:$8 sps:$4 sm:$0xff]  }
  0xe5   :  { %2197 = vmatprep.subr.bf16.mxu1 %v3151_v58  ;;  %v3188_v15 = vld [vmem:[%s4251_s3 + $0x190] ss:$8 sps:$4 sm:$0xff]  }
  0xe7   :  { %2157 = vmatpush1.bf16.msra.mxu0 %v3101_v55  ;;  %v3185_v55 = vld [vmem:[%s4251_s3 + $0x1a0] ss:$8 sps:$4 sm:$0xff]  }
  0xe8   :  { %2158 = vmatprep.subr.bf16.mxu0 %v3106_v56  ;;  %2198 = vmatpush1.bf16.msra.mxu1 %v3149_v6  ;;  %v3191_v6 = vld [vmem:[%s4251_s3 + $0x180] ss:$8 sps:$4 sm:$0xff]  }
  0xe9   :  { %2199 = vmatprep.subr.bf16.mxu1 %v3154_v61 }
  0xeb   :  { %2159 = vmatpush1.bf16.msra.mxu0 %v3104_v47 }
  0xec   :  { %2160 = vmatprep.subr.bf16.mxu0 %v3109_v44  ;;  %2200 = vmatpush1.bf16.msra.mxu1 %v3152_v35  ;;  %v3190_v44 = vld [vmem:[%s4251_s3 + $0x194] ss:$8 sps:$4 sm:$0xff]   ;;  %v255_v35 = vld [vmem:[%s4252_s2] sm:$0xf] }
  0xed   :  { %2201 = vmatprep.subr.bf16.mxu1 %v3157_v0 }
  0xef   :  { %2161 = vmatpush1.bf16.msra.mxu0 %v3107_v59  ;;  %v3193_v59 = vld [vmem:[%s4251_s3 + $0x184] ss:$8 sps:$4 sm:$0xff]  }
  0xf0   :  { %2162 = vmatprep.subr.bf16.mxu0 %v3112_v60  ;;  %2202 = vmatpush1.bf16.msra.mxu1 %v3155_v2  ;;  %v257_v60 = vlaneseq }
  0xf1   :  { %2203 = vmatprep.subr.bf16.mxu1 %v3160_v4 }
  0xf2   :  { %v4171_v61 = vshrl.u32 %v257_v60, 7 }
  0xf3   :  { %2163 = vmatpush1.bf16.msra.mxu0 %v3110_v62 }
  0xf4   :  { %2164 = vmatprep.subr.bf16.mxu0 %v3115_v63  ;;  %2204 = vmatpush1.bf16.msra.mxu1 %v3158_v8  ;;  %v259_v62 = vsub.s32 0, %v4171_v61  ;;  %v263_v63 = vsub.s32 1, %v4171_v61 }
  0xf5   :  { %2205 = vmatprep.subr.bf16.mxu1 %v3163_v14 }
  0xf6   :  { %v260_v0 = vrot.slane %v255_v35, %v259_v62 }
  0xf7   :  { %2165 = vmatpush1.bf16.msra.mxu0 %v3113_v1  ;;  %v264_v1 = vrot.slane %v255_v35, %v263_v63 }
  0xf8   :  { %2166 = vmatprep.subr.bf16.mxu0 %v3118_v3  ;;  %2206 = vmatpush1.bf16.msra.mxu1 %v3161_v17 }
  0xf9   :  { %2207 = vmatprep.subr.bf16.mxu1 %v3166_v24 }
  0xfb   :  { %2167 = vmatpush1.bf16.msra.mxu0 %v3116_v5 }
  0xfc   :  { %2168 = vmatprep.subr.bf16.mxu0 %v3121_v9  ;;  %2208 = vmatpush1.bf16.msra.mxu1 %v3164_v25 }
  0xfd   :  { %2209 = vmatprep.subr.bf16.mxu1 %v3169_v30  ;;  %v3196_v30 = vld [vmem:[%s4253_s5 + $0x70] sm:$0xff]  }
  0xff   :  { %2169 = vmatpush1.bf16.msra.mxu0 %v3119_v10 }
 0x100   :  { %2170 = vmatprep.subr.bf16.mxu0 %v3124_v11  ;;  %2210 = vmatpush1.bf16.msra.mxu1 %v3167_v16  ;;  %v267_v16 = vsub.s32 2, %v4171_v61 }
 0x101   :  { %2211 = vmatprep.subr.bf16.mxu1 %v3172_v31  ;;  %v3197_v31 = vld [vmem:[%s4253_s5 + $0x30] sm:$0xff]  }
 0x102   :  { %v4064_v18 = vpop.f32.mrf.mxu0 }
 0x103   :  { %v4066_v19 = vpop.f32.mrf.mxu1  ;;  %2171 = vmatpush2.bf16.msra.mxu0 %v3122_v12  ;;  %v1457_v2 = vadd.f32 %v4064_v18, %v260_v0 }
 0x104   :  { %v4071_v21 = vpop.f32.mrf.mxu0  ;;  %2172 = vmatprep.subr.bf16.mxu0 %v3127_v13  ;;  %2212 = vmatpush2.bf16.msra.mxu1 %v3170_v33  ;;  %v3198_v33 = vld [vmem:[%s4253_s5 + $0x68] sm:$0xff]  }
 0x105   :  { %v4073_v22 = vpop.f32.mrf.mxu1  ;;  %2213 = vmatprep.subr.bf16.mxu1 %v3175_v36  ;;  %v1459_v3 = vadd.f32 %v4071_v21, %v264_v1  ;;  %v1498_v4 = vadd.f32 %v4066_v19, %v1457_v2  ;;  %v3199_v36 = vld [vmem:[%s4253_s5 + $0x28] sm:$0xff]  }
 0x106   :  { %v1460_v26 = vpop.f32.mrf.mxu0  ;;  %v3206_v1 = vld [vmem:[%s4253_s5 + $0x48] sm:$0xff]  }
 0x107   :  { %v1501_v27 = vpop.f32.mrf.mxu1  ;;  %2173 = vmatpush2.bf16.msra.mxu0 %v3125_v20  ;;  %v1500_v8 = vadd.f32 %v4073_v22, %v1459_v3  ;;  %v3207_v2 = vld [vmem:[%s4253_s5 + $0x8] sm:$0xff]   ;;  %v3208_v3 = vld [vmem:[%s4253_s5 + $0x40] sm:$0xff]  }
 0x108   :  { %v1461_v51 = vpop.f32.mrf.mxu0  ;;  %2174 = vmatprep.subr.bf16.mxu0 %v3130_v23  ;;  %2214 = vmatpush2.bf16.msra.mxu1 %v3173_v38  ;;  %v3200_v38 = vld [vmem:[%s4253_s5 + $0x60] sm:$0xff]  }
 0x109   :  { %v1502_v28 = vpop.f32.mrf.mxu1  ;;  %2215 = vmatprep.subr.bf16.mxu1 %v3178_v40  ;;  %v3201_v40 = vld [vmem:[%s4253_s5 + $0x20] sm:$0xff]  }
 0x10a   :  { %v3194_v28 = vld [vmem:[%s4253_s5 + $0x78] sm:$0xff]  }
 0x10b   :  { %2175 = vmatpush2.bf16.msra.mxu0 %v3128_v7 }
 0x10c   :  { %2176 = vmatprep.subr.bf16.mxu0 %v3133_v29  ;;  %2216 = vmatpush2.bf16.msra.mxu1 %v3176_v42  ;;  %v3195_v29 = vld [vmem:[%s4253_s5 + $0x38] sm:$0xff]  }
 0x10d   :  { %2217 = vmatprep.subr.bf16.mxu1 %v3181_v45 }
 0x10f   :  { %2177 = vmatpush2.bf16.msra.mxu0 %v3131_v32  ;;  %v271_v32 = vsub.s32 3, %v4171_v61  ;;  %v2715_v61 = vld [vmem:[%s4255_s6] ss:$0 sm:$0xff] }
 0x110   :  { %2178 = vmatprep.subr.bf16.mxu0 %v3136_v34  ;;  %2218 = vmatpush2.bf16.msra.mxu1 %v3179_v48  ;;  %v268_v34 = vrot.slane %v255_v35, %v267_v16 }
 0x111   :  { %2219 = vmatprep.subr.bf16.mxu1 %v3184_v50 }
 0x113   :  { %2179 = vmatpush2.bf16.msra.mxu0 %v3134_v37  ;;  %v272_v37 = vrot.slane %v255_v35, %v271_v32 }
 0x114   :  { %2180 = vmatprep.subr.bf16.mxu0 %v3139_v39  ;;  %2220 = vmatpush2.bf16.msra.mxu1 %v3182_v53  ;;  %v3203_v53 = vld [vmem:[%s4253_s5 + $0x18] sm:$0xff]  }
 0x115   :  { %2221 = vmatprep.subr.bf16.mxu1 %v3187_v54 }
 0x117   :  { %2181 = vmatpush2.bf16.msra.mxu0 %v3137_v41  ;;  %v3202_v41 = vld [vmem:[%s4253_s5 + $0x58] sm:$0xff]  }
 0x118   :  { %2182 = vmatprep.subr.bf16.mxu0 %v3142_v43  ;;  %2222 = vmatpush2.bf16.msra.mxu1 %v3185_v55 }
 0x119   :  { %2223 = vmatprep.subr.bf16.mxu1 %v3190_v44 }
 0x11b   :  { %2183 = vmatpush2.bf16.msra.mxu0 %v3140_v46 }
 0x11c   :  { %2184 = vmatprep.subr.bf16.mxu0 %v3145_v49  ;;  %2224 = vmatpush2.bf16.msra.mxu1 %v3188_v15 }
 0x11d   :  { %2225 = vmatprep.subr.bf16.mxu1 %v3193_v59 }
 0x11f   :  { %2185 = vmatpush2.bf16.msra.mxu0 %v3143_v52 }
 0x120   :  { %2226 = vmatpush2.bf16.msra.mxu1 %v3191_v6  ;;  %2732 = vmatprep.subr.bf16.mxu0 %v3194_v28  ;;  %v3205_v6 = vld [vmem:[%s4253_s5 + $0x10] sm:$0xff]  }
 0x123   :  { %v1579_v56 = vpop.f32.mrf.mxu1 }
 0x125   :  { %v1581_v47 = vpop.f32.mrf.mxu1 }
 0x127   :  { %v1583_v57 = vpop.f32.mrf.mxu1 }
 0x129   :  { %v1584_v58 = vpop.f32.mrf.mxu1 }
 0x142   :  { %v1538_v5 = vpop.f32.mrf.mxu0 }
 0x143   :  { %v1539_v9 = vadd.f32 %v1538_v5, %v1498_v4  ;;  %v3209_v4 = vld [vmem:[%s4253_s5] sm:$0xff]  }
 0x144   :  { %v1540_v10 = vpop.f32.mrf.mxu0 }
 0x145   :  { %v1580_v11 = vadd.f32 %v1579_v56, %v1539_v9  ;;  %v1541_v12 = vadd.f32 %v1540_v10, %v1500_v8  ;;  %v3204_v56 = vld [vmem:[%s4253_s5 + $0x50] sm:$0xff]  }
 0x146   :  { %v1542_v13 = vpop.f32.mrf.mxu0 }
 0x147   :  { %v1582_v14 = vadd.f32 %v1581_v47, %v1541_v12  ;;  %v1750_v17 = vmax.f32 %v1580_v11, 0.0  ;;  %v1822_v11 = vld [vmem:[%s4254_s4] sm:$0x3] }
 0x148   :  { %v1543_v20 = vpop.f32.mrf.mxu0  ;;  %v1827_v12 = vrot.slane %v1822_v11, %v259_v62  ;;  %v1831_v13 = vrot.slane %v1822_v11, %v263_v63 }
 0x149   :  { %v1751_v23 = vmax.f32 %v1582_v14, 0.0  ;;  %v1754_v25 = vpack.c.bf16 %v1750_v17, %v1750_v17 }
 0x14b   :  { %v1755_v24 = vpack.c.bf16 %v1751_v23, %v1751_v23 }
 0x14d   :  { %2186 = vmatprep.mubr.bf16.mxu0 %v1755_v24 }
 0x14e   :  { %2187 = vmatmul.mubr.bf16.vlgmr.msra.gmra.mxu0 %v1754_v25 }
 0x14f   :  { %2733 = vmatpush3.bf16.msra.mxu0 %v3195_v29 }
 0x150   :  { %2734 = vmatprep.subr.bf16.mxu0 %v3196_v30 }
 0x153   :  { %2735 = vmatpush3.bf16.msra.mxu0 %v3197_v31 }
 0x154   :  { %2736 = vmatprep.subr.bf16.mxu0 %v3198_v33 }
 0x157   :  { %2737 = vmatpush3.bf16.msra.mxu0 %v3199_v36 }
 0x158   :  { %2738 = vmatprep.subr.bf16.mxu0 %v3200_v38 }
 0x15b   :  { %2739 = vmatpush3.bf16.msra.mxu0 %v3201_v40 }
 0x15c   :  { %2740 = vmatprep.subr.bf16.mxu0 %v3202_v41 }
 0x15f   :  { %2741 = vmatpush3.bf16.msra.mxu0 %v3203_v53 }
 0x160   :  { %2742 = vmatprep.subr.bf16.mxu0 %v3204_v56 }
 0x163   :  { %v1620_v18 = vpop.f32.mrf.mxu1  ;;  %2743 = vmatpush3.bf16.msra.mxu0 %v3205_v6 }
 0x164   :  { %v1621_v39 = vadd.f32 %v1620_v18, %v268_v34  ;;  %2744 = vmatprep.subr.bf16.mxu0 %v3206_v1 }
 0x165   :  { %v1622_v21 = vpop.f32.mrf.mxu1 }
 0x166   :  { %v1623_v42 = vadd.f32 %v1622_v21, %v272_v37 }
 0x167   :  { %v1624_v26 = vpop.f32.mrf.mxu1  ;;  %2745 = vmatpush3.bf16.msra.mxu0 %v3207_v2 }
 0x168   :  { %2746 = vmatprep.subr.bf16.mxu0 %v3208_v3 }
 0x169   :  { %v1625_v19 = vpop.f32.mrf.mxu1 }
 0x16b   :  { %2747 = vmatpush3.bf16.msra.mxu0 %v3209_v4 }
 0x182   :  { %v1661_v27 = vpop.f32.mrf.mxu0 }
 0x183   :  { %v1662_v43 = vadd.f32 %v1661_v27, %v1621_v39 }
 0x184   :  { %v1663_v7 = vpop.f32.mrf.mxu0 }
 0x185   :  { %v1664_v48 = vadd.f32 %v1663_v7, %v1623_v42 }
 0x186   :  { %v1665_v22 = vpop.f32.mrf.mxu0 }
 0x188   :  { %v1666_v51 = vpop.f32.mrf.mxu0 }
 0x1a2   :  { %v1743_v46 = vpop.f32.mrf.mxu0 }
 0x1a3   :  { %v1702_v45 = vpop.f32.mrf.mxu1 }
 0x1a4   :  { %v1703_v49 = vadd.f32 %v1702_v45, %v1662_v43  ;;  %v1745_v52 = vpop.f32.mrf.mxu0 }
 0x1a5   :  { %v1704_v50 = vpop.f32.mrf.mxu1 }
 0x1a6   :  { %v1744_v54 = vadd.f32 %v1743_v46, %v1703_v49  ;;  %v1705_v55 = vadd.f32 %v1704_v50, %v1664_v48  ;;  %v1747_v44 = vpop.f32.mrf.mxu0 }
 0x1a7   :  { %v1706_v47 = vpop.f32.mrf.mxu1 }
 0x1a8   :  { %v1746_v15 = vadd.f32 %v1745_v52, %v1705_v55  ;;  %v1752_v57 = vmax.f32 %v1744_v54, 0.0  ;;  %v1748_v59 = vpop.f32.mrf.mxu0 }
 0x1a9   :  { %v1707_v58 = vpop.f32.mrf.mxu1 }
 0x1aa   :  { %v1753_v60 = vmax.f32 %v1746_v15, 0.0  ;;  %v1756_v0 = vpack.c.bf16 %v1752_v57, %v1752_v57 }
 0x1ac   :  { %v1757_v35 = vpack.c.bf16 %v1753_v60, %v1753_v60 }
 0x1ae   :  { %2227 = vmatprep.mubr.bf16.mxu1 %v1757_v35 }
 0x1af   :  { %2228 = vmatmul.mubr.bf16.vlgmr.msra.gmra.mxu1 %v1756_v0 }
 0x20e   :  { %v2188_v5 = vpop.f32.mrf.mxu0 }
 0x20f   :  { %v2189_v14 = vadd.f32 %v2188_v5, %v1827_v12 }
 0x210   :  { %v2190_v8 = vpop.f32.mrf.mxu0 }
 0x211   :  { %v2191_v20 = vadd.f32 %v2190_v8, %v1831_v13 }
 0x212   :  { %v2192_v9 = vpop.f32.mrf.mxu0 }
 0x214   :  { %v2193_v10 = vpop.f32.mrf.mxu0 }
 0x26f   :  { %v2229_v17 = vpop.f32.mrf.mxu1 }
 0x270   :  { %v2230_v23 = vadd.f32 %v2229_v17, %v2189_v14 }
 0x271   :  { %v2231_v24 = vpop.f32.mrf.mxu1 }
 0x272   :  { %v2232_v25 = vadd.f32 %v2231_v24, %v2191_v20  ;;  %v2236_v18 = vmax.f32 %v2230_v23, 0.0 }
 0x273   :  { %v2233_v21 = vpop.f32.mrf.mxu1 }
 0x274   :  { %v2237_v26 = vmax.f32 %v2232_v25, 0.0  ;;  %v2238_v7 = vpack.c.bf16 %v2236_v18, %v2236_v18 }
 0x275   :  { %v2234_v19 = vpop.f32.mrf.mxu1 }
 0x276   :  { %v2239_v27 = vpack.c.bf16 %v2237_v26, %v2237_v26 }
 0x278   :  { %2407 = vmatprep.mubr.bf16.mxu0 %v2239_v27 }
 0x279   :  { %2408 = vmatmul.mubr.bf16.vlgmr.msra.gmra.mxu0 %v2238_v7 }
 0x339   :  { %v2748_v22 = vpop.f32.mrf.mxu0 }
 0x33b   :  { %v2749_v62 = vpop.f32.mrf.mxu0 }
 0x33c   :  { %v2750_v63 = vadd.f32 %v2749_v62, %v2748_v22 }
 0x33d   :  { %v2751_v51 = vpop.f32.mrf.mxu0 }
 0x33e   :  { %v2410_v28 = vadd.f32 %v2750_v63, %v2715_v61 }
 0x33f   :  { %v2752_v29 = vpop.f32.mrf.mxu0 }
 0x340   :  { %2415 = vst [vmem:[%s4256_s7] sm:$0xff] %v2410_v28 }

</bundles_post_ra>
